<compile_context>
chip_gen: v6e
topology: v6e:2x2x1
jax: 0.10.0
libtpu: 0.0.40
codegen_flags: <defaults>
</compile_context>

<pallas_src>
import jax
import jax.numpy as jnp
from jax import lax
from jax.experimental import pallas as pl
from jax.experimental.pallas import tpu as pltpu

PAD = 0  # padding index (global constant in the original code base)


def _round_up(x, m):
    return ((x + m - 1) // m) * m


def _vmem_limit(block_bytes, scratch_bytes=0):
    """Explicit scoped-VMEM budget sized from the actual blocks (+ margin)."""
    need = 3 * int(sum(block_bytes)) + int(scratch_bytes) + (4 << 20)
    return int(min(max(need, 32 << 20), 128 << 20))


def _unflatten(x, T, B_pad, B, width=None):
    """time-major, batch-padded flat [T*B_pad, D] -> batch-first [B, T, .]."""
    D = x.shape[-1]
    y = x.reshape(T, B_pad, D)[:, :B]
    if width is not None:
        y = y[..., :width]
    return jnp.transpose(y, (1, 0, 2)).astype(jnp.float32)


# ----------------------------------------------------------------------------
# Kernel 1: hoisted BiLSTM input projection (both directions in one body).
# ----------------------------------------------------------------------------
def _proj_kernel(x0_ref, x1_ref, m_ref, w0_ref, w1_ref, b_ref, g_ref):
    x0 = x0_ref[...]
    x1 = x1_ref[...]
    m = m_ref[...]                                     # f32 [R,1] non-pad mask
    for d in range(2):                                 # forward / backward
        g = jnp.dot(x0, w0_ref[d], preferred_element_type=jnp.float32)
        g = g + jnp.dot(x1, w1_ref[d], preferred_element_type=jnp.float32)
        # Per-row mask applied to the f32 accumulation (== masking the input,
        # since the mask is a per-row scalar), then fold in b_ih + b_hh.
        g_ref[d] = (g * m + b_ref[d]).astype(g_ref.dtype)


# ----------------------------------------------------------------------------
# Kernel 2: serial bidirectional recurrence, grid over T, directions fused.
# ----------------------------------------------------------------------------
def _make_rec_kernel(H):
    def kernel(gf_ref, gb_ref, whh_ref, of_ref, ob_ref, h_scr, c_scr):
        @pl.when(pl.program_id(0) == 0)
        def _():
            h_scr[...] = jnp.zeros_like(h_scr)
            c_scr[...] = jnp.zeros_like(c_scr)

        # Both directions' serial matmuls issued back-to-back: one chain hides
        # the other's MXU drain / EUP latency on single-TC chips (v5e/v6e).
        g_f = gf_ref[...].astype(jnp.float32) + jnp.dot(
            h_scr[0], whh_ref[0], preferred_element_type=jnp.float32)
        g_b = gb_ref[...].astype(jnp.float32) + jnp.dot(
            h_scr[1], whh_ref[1], preferred_element_type=jnp.float32)

        for d, (g, o_ref) in enumerate(((g_f, of_ref), (g_b, ob_ref))):
            # NOTE: choose H as a multiple of 128 at production sizes so each
            # gate slice is a whole lane group (unmasked vst, no relayouts).
            i_g = jax.nn.sigmoid(g[:, 0 * H:1 * H])
            f_g = jax.nn.sigmoid(g[:, 1 * H:2 * H])
            g_g = jnp.tanh(g[:, 2 * H:3 * H])
            o_g = jax.nn.sigmoid(g[:, 3 * H:4 * H])
            c_new = f_g * c_scr[d] + i_g * g_g
            h_new = (o_g * jnp.tanh(c_new)).astype(jnp.bfloat16)
            c_scr[d] = c_new
            h_scr[d] = h_new                 # bf16 carry: feeds next h@W_hh
            o_ref[...] = h_new
    return kernel


def bilstm(x0, x1, mask, p, *, T, B_pad):
    """One bidirectional LSTM layer over the flat [N, .] layout.

    x0/x1: the two input parts (their concat is the LSTM input), bf16 [N, Di].
    mask : non-pad mask, f32 [N, 1].
    Returns (h_fwd, h_bwd): bf16 [N, H] each (no [.., 2H] concat materialized).
    """
    N, D0 = x0.shape
    D1 = x1.shape[1]
    H = p["whh"].shape[1]
    G = 4 * H
    assert N == T * B_pad and B_pad % 8 == 0

    # -- 1) hoisted input projection: one big row-blocked MXU pass, bf16 out --
    R = min(N, 512)
    proj_blocks = (R * D0 * 2, R * D1 * 2, R * 4, 2 * D0 * G * 2,
                   2 * D1 * G * 2, 2 * G * 4, 2 * R * G * 2)
    gates = pl.pallas_call(
        _proj_kernel,
        grid=(pl.cdiv(N, R),),
        in_specs=[
            pl.BlockSpec((R, D0), lambda i: (i, 0)),
            pl.BlockSpec((R, D1), lambda i: (i, 0)),
            pl.BlockSpec((R, 1), lambda i: (i, 0)),
            pl.BlockSpec((2, D0, G), lambda i: (0, 0, 0)),
            pl.BlockSpec((2, D1, G), lambda i: (0, 0, 0)),
            pl.BlockSpec((2, 1, G), lambda i: (0, 0, 0)),
        ],
        out_specs=pl.BlockSpec((2, R, G), lambda i: (0, i, 0)),
        out_shape=jax.ShapeDtypeStruct((2, N, G), jnp.bfloat16),
        compiler_params=pltpu.CompilerParams(
            dimension_semantics=("parallel",),
            vmem_limit_bytes=_vmem_limit(proj_blocks)),
    )(x0, x1, mask, p["wih0"], p["wih1"], p["b"])

    # -- 2) serial recurrence: grid=(T,), both directions fused in one body.
    #       Auto-pipeline streams one (B_pad,4H) bf16 gate slice per direction
    #       per step (prefetch t+1 while computing t); resident VMEM is
    #       O(B_pad*4H), not O(N*4H).
    gates4 = gates.reshape(2, T, B_pad, G)            # free reshape
    rec_blocks = (B_pad * G * 2, B_pad * G * 2, 2 * H * G * 2,
                  B_pad * H * 2, B_pad * H * 2)
    scratch_bytes = 2 * B_pad * H * (2 + 4)
    of, ob = pl.pallas_call(
        _make_rec_kernel(H),
        grid=(T,),
        in_specs=[
            pl.BlockSpec((None, None, B_pad, G), lambda t: (0, t, 0, 0)),
            pl.BlockSpec((None, None, B_pad, G), lambda t: (1, T - 1 - t, 0, 0)),
            pl.BlockSpec((2, H, G), lambda t: (0, 0, 0)),
        ],
        out_specs=(
            pl.BlockSpec((None, B_pad, H), lambda t: (t, 0, 0)),
            pl.BlockSpec((None, B_pad, H), lambda t: (T - 1 - t, 0, 0)),
        ),
        out_shape=(jax.ShapeDtypeStruct((T, B_pad, H), jnp.bfloat16),
                   jax.ShapeDtypeStruct((T, B_pad, H), jnp.bfloat16)),
        scratch_shapes=[pltpu.VMEM((2, B_pad, H), jnp.bfloat16),   # h carry
                        pltpu.VMEM((2, B_pad, H), jnp.float32)],   # c carry
        compiler_params=pltpu.CompilerParams(
            dimension_semantics=("arbitrary",),
            vmem_limit_bytes=_vmem_limit(rec_blocks, scratch_bytes)),
    )(gates4, gates4, p["whh"])
    # TODO(synk): on v7x (2 TensorCores) the two directions could instead be
    # split across cores via core_map; kept fused for single-TC v5e/v6e.
    return of.reshape(N, H), ob.reshape(N, H)


# ----------------------------------------------------------------------------
# Kernel 3: fusion_layer + tag-embedding add + tagging_layer + greedy argmax.
# ----------------------------------------------------------------------------
def _make_fuse_tag_kernel(H, n_tag, TP):
    def kernel(h0_ref, h1_ref, tg_ref, wf_ref, bf_ref, tt_ref, wt_ref, bt_ref,
               hid_ref, sc_ref, tago_ref):
        R = h0_ref.shape[0]
        lanes = lax.broadcasted_iota(jnp.int32, (R, TP), 1)
        # Previous-depth greedy tags -> one-hot; row PAD(0) of the fused tag
        # table is all-zero, so depth-0 (tags==PAD) adds exactly nothing.
        onehot = (lanes == tg_ref[...]).astype(jnp.bfloat16)
        fused = jnp.dot(h0_ref[...], wf_ref[0],
                        preferred_element_type=jnp.float32)
        fused = fused + jnp.dot(h1_ref[...], wf_ref[1],
                                preferred_element_type=jnp.float32)
        fused = fused + jnp.dot(onehot, tt_ref[...],
                                preferred_element_type=jnp.float32)
        fused = fused + bf_ref[...]
        hid_ref[...] = fused.astype(hid_ref.dtype)
        sc = jnp.dot(fused.astype(jnp.bfloat16), wt_ref[...],
                     preferred_element_type=jnp.float32) + bt_ref[...]
        sc_ref[...] = sc
        # In-kernel greedy argmax over the n_tag valid lanes (XLU reduction);
        # saves a separate HBM pass over the scores between depths.
        scm = jnp.where(lanes < n_tag, sc, -jnp.inf)
        mx = jnp.max(scm, axis=-1, keepdims=True)
        tago_ref[...] = jnp.min(jnp.where(scm >= mx, lanes, TP),
                                axis=-1, keepdims=True).astype(jnp.int32)
    return kernel


def fuse_and_tag(h0, h1, tags, p, n_tag):
    """Returns (word_hiddens bf16 [N,2H], scores f32 [N,TP] lane-dense,
    greedy tags int32 [N,1])."""
    N, H = h0.shape
    Dh = 2 * H
    TP = p["wt"].shape[1]
    R = min(N, 512)
    blocks = (R * H * 2, R * H * 2, R * 4, 2 * H * Dh * 2, Dh * 4,
              TP * Dh * 2, Dh * TP * 2, TP * 4, R * Dh * 2, R * TP * 4, R * 4)
    hid, sc, tg = pl.pallas_call(
        _make_fuse_tag_kernel(H, n_tag, TP),
        grid=(pl.cdiv(N, R),),
        in_specs=[
            pl.BlockSpec((R, H), lambda i: (i, 0)),
            pl.BlockSpec((R, H), lambda i: (i, 0)),
            pl.BlockSpec((R, 1), lambda i: (i, 0)),
            pl.BlockSpec((2, H, Dh), lambda i: (0, 0, 0)),
            pl.BlockSpec((1, Dh), lambda i: (0, 0)),
            pl.BlockSpec((TP, Dh), lambda i: (0, 0)),
            pl.BlockSpec((Dh, TP), lambda i: (0, 0)),
            pl.BlockSpec((1, TP), lambda i: (0, 0)),
        ],
        out_specs=(pl.BlockSpec((R, Dh), lambda i: (i, 0)),
                   pl.BlockSpec((R, TP), lambda i: (i, 0)),
                   pl.BlockSpec((R, 1), lambda i: (i, 0))),
        out_shape=(jax.ShapeDtypeStruct((N, Dh), jnp.bfloat16),
                   jax.ShapeDtypeStruct((N, TP), jnp.float32),
                   jax.ShapeDtypeStruct((N, 1), jnp.int32)),
        compiler_params=pltpu.CompilerParams(
            dimension_semantics=("parallel",),
            vmem_limit_bytes=_vmem_limit(blocks)),
    )(h0, h1, tags, p["wf"], p["bf"], p["tagtbl"], p["wt"], p["bt"])
    return hid, sc, tg


# ----------------------------------------------------------------------------
# Parameter init (deterministic; mirrors the shapes of Model.__init__;
# matmul weights stored bf16, biases / masks f32).
# ----------------------------------------------------------------------------
def init_params(key, n_word, n_type, n_tag, dim_word_emb, dim_type_emb,
                dim_hidden):
    H = dim_hidden // 2
    Dh = dim_hidden
    TP = _round_up(n_tag, 128)            # lane-dense tagging output width
    keys = iter(jax.random.split(key, 64))

    def unif(shape, scale):
        return jax.random.uniform(next(keys), shape, jnp.float32, -scale, scale)

    def lstm_params(part_dims):
        k = 1.0 / float(H) ** 0.5
        wih_parts = [[] for _ in part_dims]
        whh, bias = [], []
        for _ in range(2):                # forward / backward directions
            w_ih = unif((sum(part_dims), 4 * H), k)      # [Din, 4H] input-major
            off = 0
            for pi, pd in enumerate(part_dims):
                wih_parts[pi].append(w_ih[off:off + pd])
                off += pd
            whh.append(unif((H, 4 * H), k))
            bias.append(unif((1, 4 * H), k) + unif((1, 4 * H), k))  # b_ih+b_hh
        out = {"whh": jnp.stack(whh).astype(jnp.bfloat16),           # [2,H,4H]
               "b": jnp.stack(bias)}                                 # [2,1,4H]
        for pi in range(len(part_dims)):
            out[f"wih{pi}"] = jnp.stack(wih_parts[pi]).astype(jnp.bfloat16)
        return out

    word_emb = jax.random.normal(next(keys), (n_word, dim_word_emb),
                                 jnp.float32).at[PAD].set(0.0)
    type_emb = jax.random.normal(next(keys), (n_type, dim_type_emb),
                                 jnp.float32).at[PAD].set(0.0)
    tag_emb = jax.random.normal(next(keys), (n_tag, Dh),
                                jnp.float32).at[PAD].set(0.0)

    kf = 1.0 / float(Dh) ** 0.5
    wf_full = unif((Dh, Dh), kf)                     # [2H, 2H] input-major
    wt_raw = unif((Dh, n_tag), kf)
    # Fused per-tag contribution: fusion(tag_emb) without bias (linearity),
    # lane-padded; row 0 (PAD) is zero so "no previous tags" adds nothing.
    tag_tbl = jnp.zeros((TP, Dh), jnp.float32).at[:n_tag].set(tag_emb) @ wf_full

    head = {
        "wf": jnp.stack([wf_full[:H], wf_full[H:]]).astype(jnp.bfloat16),
        "bf": unif((1, Dh), kf),                                      # f32
        "tagtbl": tag_tbl.astype(jnp.bfloat16),                       # [TP,2H]
        "wt": jnp.zeros((Dh, TP), jnp.float32)
                 .at[:, :n_tag].set(wt_raw).astype(jnp.bfloat16),
        "bt": jnp.zeros((1, TP), jnp.float32)
                 .at[:, :n_tag].set(unif((1, n_tag), kf)),
    }

    return {"word_emb": word_emb.astype(jnp.bfloat16),
            "type_emb": type_emb.astype(jnp.bfloat16),
            "enc": lstm_params((dim_word_emb, dim_type_emb)),
            "iter": lstm_params((H, H)),
            "head": head,
            "n_tag": n_tag}


# ----------------------------------------------------------------------------
# Full forward pass (mirrors Model.forward, mode='train' path)
# ----------------------------------------------------------------------------
def model_forward(tokens, types, params, depth):
    B, T = tokens.shape
    B_pad = _round_up(max(B, 1), 8)
    N = T * B_pad
    n_tag = params["n_tag"]

    # time-major, batch-padded flat layout: row = t * B_pad + b
    tok = jnp.transpose(tokens)
    typ = jnp.transpose(types)
    if B_pad != B:
        pad = ((0, 0), (0, B_pad - B))
        tok = jnp.pad(tok, pad, constant_values=PAD)
        typ = jnp.pad(typ, pad, constant_values=PAD)
    tok = tok.reshape(N)
    typ = typ.reshape(N)

    mask = (tok != PAD).astype(jnp.float32)[:, None]            # [N, 1] f32
    w = jnp.take(params["word_emb"], tok, axis=0)               # [N, Dw] bf16
    ty = jnp.take(params["type_emb"], typ, axis=0)              # [N, Dt] bf16

    # encoding BiLSTM; the reference's cat([word, type], -1) is realized via
    # split input-projection weights (no activation concat materialized).
    h0, h1 = bilstm(w, ty, mask, params["enc"], T=T, B_pad=B_pad)

    tags = jnp.zeros((N, 1), jnp.int32)   # PAD tags -> zero tag contribution
    all_depth_hiddens, all_depth_scores = [], []
    for d in range(depth):
        # iterative BiLSTM (non-pad masking of its input happens in-kernel)
        h0, h1 = bilstm(h0, h1, mask, params["iter"], T=T, B_pad=B_pad)
        # TODO(synk): nn.Dropout applied as identity (eval-mode determinism);
        # stochastic train-mode dropout omitted.
        hid, scores, tags = fuse_and_tag(h0, h1, tags, params["head"], n_tag)
        all_depth_hiddens.append(_unflatten(hid, T, B_pad, B))
        all_depth_scores.append(_unflatten(scores, T, B_pad, B, width=n_tag))
    return all_depth_hiddens, all_depth_scores


if __name__ == "__main__":
    n_word, n_type, n_tag = 20, 6, 5
    dim_word_emb, dim_type_emb, dim_hidden = 16, 16, 32
    depth = 2
    B, T = 2, 8

    key = jax.random.PRNGKey(0)
    pkey, tkey, ykey = jax.random.split(key, 3)
    params = init_params(pkey, n_word, n_type, n_tag,
                         dim_word_emb, dim_type_emb, dim_hidden)

    tokens = jax.random.randint(tkey, (B, T), 1, n_word, dtype=jnp.int32)
    types = jax.random.randint(ykey, (B, T), 1, n_type, dtype=jnp.int32)
    # pad the tail of each sequence to exercise the non-pad mask
    tokens = tokens.at[:, -2:].set(PAD)
    types = types.at[:, -2:].set(PAD)

    all_h, all_s = model_forward(tokens, types, params, depth)
    jax.block_until_ready(all_s[-1])

    assert len(all_h) == depth and len(all_s) == depth
    assert all_h[0].shape == (B, T, dim_hidden)
    assert all_s[0].shape == (B, T, n_tag)
    assert all(bool(jnp.all(jnp.isfinite(h))) for h in all_h)
    assert all(bool(jnp.all(jnp.isfinite(s))) for s in all_s)
    print("KERNEL_OK")
</pallas_src>

<mosaic_0001>
module attributes {stable_mosaic.version = 11 : i64} {
  func.func @_proj_kernel(%arg0: i32, %arg1: memref<64x16xbf16, #tpu.memory_space<vmem>>, %arg2: memref<64x16xbf16, #tpu.memory_space<vmem>>, %arg3: memref<64x1xf32, #tpu.memory_space<vmem>>, %arg4: memref<2x16x64xbf16, #tpu.memory_space<vmem>>, %arg5: memref<2x16x64xbf16, #tpu.memory_space<vmem>>, %arg6: memref<2x1x64xf32, #tpu.memory_space<vmem>>, %arg7: memref<2x64x64xbf16, #tpu.memory_space<vmem>>) attributes {dimension_semantics = [#tpu.dimension_semantics<parallel>], iteration_bounds = array<i64: 1>, scalar_prefetch = 0 : i64, scratch_operands = 0 : i64, tpu.core_type = #tpu.core_type<tc>, window_params = [{transform_indices = @transform_0, window_bounds = array<i64: 64, 16>}, {transform_indices = @transform_1, window_bounds = array<i64: 64, 16>}, {transform_indices = @transform_2, window_bounds = array<i64: 64, 1>}, {pipeline_mode = #tpu.pipeline_mode<synchronous>, transform_indices = @transform_3, window_bounds = array<i64: 2, 16, 64>}, {pipeline_mode = #tpu.pipeline_mode<synchronous>, transform_indices = @transform_4, window_bounds = array<i64: 2, 16, 64>}, {pipeline_mode = #tpu.pipeline_mode<synchronous>, transform_indices = @transform_5, window_bounds = array<i64: 2, 1, 64>}, {transform_indices = @transform_6, window_bounds = array<i64: 2, 64, 64>}]} {
    %c0 = arith.constant 0 : index
    %c0_0 = arith.constant 0 : index
    %0 = vector.load %arg1[%c0, %c0_0] : memref<64x16xbf16, #tpu.memory_space<vmem>>, vector<64x16xbf16>
    %c0_1 = arith.constant 0 : index
    %c0_2 = arith.constant 0 : index
    %1 = vector.load %arg2[%c0_1, %c0_2] : memref<64x16xbf16, #tpu.memory_space<vmem>>, vector<64x16xbf16>
    %c0_3 = arith.constant 0 : index
    %c0_4 = arith.constant 0 : index
    %2 = vector.load %arg3[%c0_3, %c0_4] : memref<64x1xf32, #tpu.memory_space<vmem>>, vector<64x1xf32>
    %c0_5 = arith.constant 0 : index
    %c0_6 = arith.constant 0 : index
    %c0_7 = arith.constant 0 : index
    %3 = vector.load %arg4[%c0_5, %c0_6, %c0_7] : memref<2x16x64xbf16, #tpu.memory_space<vmem>>, vector<1x16x64xbf16>
    %4 = vector.shape_cast %3 : vector<1x16x64xbf16> to vector<16x64xbf16>
    %cst = arith.constant dense<0.000000e+00> : vector<64x64xf32>
    %5 = tpu.matmul %0, %4, %cst {dimension_numbers = #tpu.dot_dimension_numbers<[1], [0], [0], [1], [0, 0, 1, 1], [], []>} : vector<64x16xbf16>, vector<16x64xbf16>, vector<64x64xf32> -> vector<64x64xf32>
    %c0_8 = arith.constant 0 : index
    %c0_9 = arith.constant 0 : index
    %c0_10 = arith.constant 0 : index
    %6 = vector.load %arg5[%c0_8, %c0_9, %c0_10] : memref<2x16x64xbf16, #tpu.memory_space<vmem>>, vector<1x16x64xbf16>
    %7 = vector.shape_cast %6 : vector<1x16x64xbf16> to vector<16x64xbf16>
    %cst_11 = arith.constant dense<0.000000e+00> : vector<64x64xf32>
    %8 = tpu.matmul %1, %7, %cst_11 {dimension_numbers = #tpu.dot_dimension_numbers<[1], [0], [0], [1], [0, 0, 1, 1], [], []>} : vector<64x16xbf16>, vector<16x64xbf16>, vector<64x64xf32> -> vector<64x64xf32>
    %9 = arith.addf %5, %8 : vector<64x64xf32>
    %10 = vector.broadcast %2 : vector<64x1xf32> to vector<64x64xf32>
    %11 = arith.mulf %9, %10 : vector<64x64xf32>
    %c0_12 = arith.constant 0 : index
    %c0_13 = arith.constant 0 : index
    %c0_14 = arith.constant 0 : index
    %12 = vector.load %arg6[%c0_12, %c0_13, %c0_14] : memref<2x1x64xf32, #tpu.memory_space<vmem>>, vector<1x1x64xf32>
    %13 = vector.shape_cast %12 : vector<1x1x64xf32> to vector<1x64xf32>
    %14 = vector.broadcast %13 : vector<1x64xf32> to vector<64x64xf32>
    %15 = arith.addf %11, %14 : vector<64x64xf32>
    %16 = arith.truncf %15 : vector<64x64xf32> to vector<64x64xbf16>
    %c0_15 = arith.constant 0 : index
    %c0_16 = arith.constant 0 : index
    %c0_17 = arith.constant 0 : index
    %17 = vector.load %arg7[%c0_15, %c0_16, %c0_17] : memref<2x64x64xbf16, #tpu.memory_space<vmem>>, vector<1x64x64xbf16>
    %18 = vector.shape_cast %17 : vector<1x64x64xbf16> to vector<64x64xbf16>
    %19 = vector.shape_cast %16 : vector<64x64xbf16> to vector<1x64x64xbf16>
    tpu.vector_store %arg7[%c0_15, %c0_16, %c0_17], %19 {strides = array<i32>} : memref<2x64x64xbf16, #tpu.memory_space<vmem>>, vector<1x64x64xbf16>,
    %c1 = arith.constant 1 : index
    %c0_18 = arith.constant 0 : index
    %c0_19 = arith.constant 0 : index
    %20 = vector.load %arg4[%c1, %c0_18, %c0_19] : memref<2x16x64xbf16, #tpu.memory_space<vmem>>, vector<1x16x64xbf16>
    %21 = vector.shape_cast %20 : vector<1x16x64xbf16> to vector<16x64xbf16>
    %cst_20 = arith.constant dense<0.000000e+00> : vector<64x64xf32>
    %22 = tpu.matmul %0, %21, %cst_20 {dimension_numbers = #tpu.dot_dimension_numbers<[1], [0], [0], [1], [0, 0, 1, 1], [], []>} : vector<64x16xbf16>, vector<16x64xbf16>, vector<64x64xf32> -> vector<64x64xf32>
    %c1_21 = arith.constant 1 : index
    %c0_22 = arith.constant 0 : index
    %c0_23 = arith.constant 0 : index
    %23 = vector.load %arg5[%c1_21, %c0_22, %c0_23] : memref<2x16x64xbf16, #tpu.memory_space<vmem>>, vector<1x16x64xbf16>
    %24 = vector.shape_cast %23 : vector<1x16x64xbf16> to vector<16x64xbf16>
    %cst_24 = arith.constant dense<0.000000e+00> : vector<64x64xf32>
    %25 = tpu.matmul %1, %24, %cst_24 {dimension_numbers = #tpu.dot_dimension_numbers<[1], [0], [0], [1], [0, 0, 1, 1], [], []>} : vector<64x16xbf16>, vector<16x64xbf16>, vector<64x64xf32> -> vector<64x64xf32>
    %26 = arith.addf %22, %25 : vector<64x64xf32>
    %27 = vector.broadcast %2 : vector<64x1xf32> to vector<64x64xf32>
    %28 = arith.mulf %26, %27 : vector<64x64xf32>
    %c1_25 = arith.constant 1 : index
    %c0_26 = arith.constant 0 : index
    %c0_27 = arith.constant 0 : index
    %29 = vector.load %arg6[%c1_25, %c0_26, %c0_27] : memref<2x1x64xf32, #tpu.memory_space<vmem>>, vector<1x1x64xf32>
    %30 = vector.shape_cast %29 : vector<1x1x64xf32> to vector<1x64xf32>
    %31 = vector.broadcast %30 : vector<1x64xf32> to vector<64x64xf32>
    %32 = arith.addf %28, %31 : vector<64x64xf32>
    %33 = arith.truncf %32 : vector<64x64xf32> to vector<64x64xbf16>
    %c1_28 = arith.constant 1 : index
    %c0_29 = arith.constant 0 : index
    %c0_30 = arith.constant 0 : index
    %34 = vector.load %arg7[%c1_28, %c0_29, %c0_30] : memref<2x64x64xbf16, #tpu.memory_space<vmem>>, vector<1x64x64xbf16>
    %35 = vector.shape_cast %34 : vector<1x64x64xbf16> to vector<64x64xbf16>
    %36 = vector.shape_cast %33 : vector<64x64xbf16> to vector<1x64x64xbf16>
    tpu.vector_store %arg7[%c1_28, %c0_29, %c0_30], %36 {strides = array<i32>} : memref<2x64x64xbf16, #tpu.memory_space<vmem>>, vector<1x64x64xbf16>,
    return
  }
  func.func @transform_0(%arg0: i32) -> (i32, i32) {
    %c0_i32 = arith.constant 0 : i32
    %c0_i32_0 = arith.constant 0 : i32
    return %arg0, %c0_i32 : i32, i32
  }
  func.func @transform_1(%arg0: i32) -> (i32, i32) {
    %c0_i32 = arith.constant 0 : i32
    %c0_i32_0 = arith.constant 0 : i32
    return %arg0, %c0_i32 : i32, i32
  }
  func.func @transform_2(%arg0: i32) -> (i32, i32) {
    %c0_i32 = arith.constant 0 : i32
    %c0_i32_0 = arith.constant 0 : i32
    return %arg0, %c0_i32 : i32, i32
  }
  func.func @transform_3(%arg0: i32) -> (i32, i32, i32) {
    %c0_i32 = arith.constant 0 : i32
    %c0_i32_0 = arith.constant 0 : i32
    %c0_i32_1 = arith.constant 0 : i32
    %c0_i32_2 = arith.constant 0 : i32
    return %c0_i32, %c0_i32_0, %c0_i32_1 : i32, i32, i32
  }
  func.func @transform_4(%arg0: i32) -> (i32, i32, i32) {
    %c0_i32 = arith.constant 0 : i32
    %c0_i32_0 = arith.constant 0 : i32
    %c0_i32_1 = arith.constant 0 : i32
    %c0_i32_2 = arith.constant 0 : i32
    return %c0_i32, %c0_i32_0, %c0_i32_1 : i32, i32, i32
  }
  func.func @transform_5(%arg0: i32) -> (i32, i32, i32) {
    %c0_i32 = arith.constant 0 : i32
    %c0_i32_0 = arith.constant 0 : i32
    %c0_i32_1 = arith.constant 0 : i32
    %c0_i32_2 = arith.constant 0 : i32
    return %c0_i32, %c0_i32_0, %c0_i32_1 : i32, i32, i32
  }
  func.func @transform_6(%arg0: i32) -> (i32, i32, i32) {
    %c0_i32 = arith.constant 0 : i32
    %c0_i32_0 = arith.constant 0 : i32
    %c0_i32_1 = arith.constant 0 : i32
    return %c0_i32, %arg0, %c0_i32_0 : i32, i32, i32
  }
}

</mosaic_0001>

<bundles_post_ra>
// kernel: tpu_custom_call.1
= control target key start
LH: loop header
LB: loop body
LE: loop exit
PB: predicated region body
PF: predicated region fallthrough
CT: control target
= control target key end

     0   :  { %vm79_vm0 = vcmask 130048   ;;  %v760_v3 = vmov 0   ;;  %s932_s0 = inlined_call_operand.vmem [shape: bf16[64,16], index: 0, kind: input, shape index: {}]   ;;  %s933_s1 = inlined_call_operand.vmem [shape: bf16[64,16], index: 1, kind: input, shape index: {}]   ;;  %s934_s2 = inlined_call_operand.vmem [shape: f32[64,1], index: 2, kind: input, shape index: {}]   ;;  %s935_s3 = inlined_call_operand.vmem [shape: bf16[2,16,64], index: 3, kind: input, shape index: {}]   ;;  %s936_s4 = inlined_call_operand.vmem [shape: bf16[2,16,64], index: 4, kind: input, shape index: {}]   ;;  %s937_s5 = inlined_call_operand.vmem [shape: f32[2,1,64], index: 5, kind: input, shape index: {}]   ;;  %s938_s6 = inlined_call_operand.hbm [shape: bf16[2,64,64], index: 6, kind: output, shape index: {}]  }
   0x1   :  { %v726_v0 = vld [vmem:[%s936_s4] sm:$0xff]   ;;  %724 = vset.pattern.permute.xlu0 %v760_v3  ;;  %v730_v5 = vld [vmem:[%s933_s1 + $0x8] sm:$0xff]   ;;  %725 = vset.pattern.permute.xlu1 %v760_v3  ;;  %v734_v9 = vld [vmem:[%s933_s1 + $0x10] sm:$0xff]  }
   0x2   :  { %v727_v1 = vld [vmem:[%s935_s3] sm:$0xff]   ;;  %680 = vmatprep.subr.bf16.mxu0 %v726_v0  ;;  %v731_v6 = vld [vmem:[%s932_s0 + $0x8] sm:$0xff]   ;;  %v735_v10 = vld [vmem:[%s932_s0 + $0x10] sm:$0xff]  }
   0x3   :  { %v728_v2 = vld [vmem:[%s933_s1] sm:$0xff]   ;;  %690 = vmatprep.subr.bf16.mxu1 %v727_v1  ;;  %681 = vmatpush3.bf16.msra.mxu0 %v726_v0  ;;  %v732_v7 = vld [vmem:[%s936_s4 + $0x8] sm:$0xff]   ;;  %v736_v11 = vld [vmem:[%s933_s1 + $0x18] sm:$0xff]  }
   0x4   :  { %v729_v4 = vld [vmem:[%s932_s0] sm:$0xff]   ;;  %691 = vmatpush3.bf16.msra.mxu1 %v727_v1  ;;  %682 = vmatprep.mubr.msk.bf16.mxu0 %vm79_vm0, %v728_v2  ;;  %v733_v8 = vld [vmem:[%s935_s3 + $0x8] sm:$0xff]   ;;  %v737_v12 = vld [vmem:[%s932_s0 + $0x18] sm:$0xff]  }
   0x5   :  { %692 = vmatprep.mubr.msk.bf16.mxu1 %vm79_vm0, %v729_v4  ;;  %700 = vmatprep.subr.bf16.mxu0 %v732_v7  ;;  %v41_v13 = vld [vmem:[%s934_s2] sm:$0xff]  ;;  %v43_v14 = vld [vmem:[%s934_s2 + $0x10] sm:$0xff]  ;;  %v42_v15 = vld [vmem:[%s934_s2 + $0x8] sm:$0xff] }
   0x6   :  { %683 = vmatmul.mubr.msk.bf16.vlgmr.msra.gmra.mxu0 %vm79_vm0, %v730_v5  ;;  %710 = vmatprep.subr.bf16.mxu1 %v733_v8  ;;  %v44_v16 = vld [vmem:[%s934_s2 + $0x18] sm:$0xff] }
   0x7   :  { %693 = vmatmul.mubr.msk.bf16.vlgmr.msra.gmra.mxu1 %vm79_vm0, %v731_v6  ;;  %701 = vmatpush3.bf16.msra.mxu0 %v732_v7 }
   0x8   :  { %711 = vmatpush3.bf16.msra.mxu1 %v733_v8  ;;  %686 = vmatprep.mubr.msk.bf16.mxu0 %vm79_vm0, %v734_v9 }
   0x9   :  { %696 = vmatprep.mubr.msk.bf16.mxu1 %vm79_vm0, %v735_v10  ;;  %262 = vperm.xlu0 %724, %v41_v13  }
   0xa   :  { %272 = vperm.xlu1 %725, %v43_v14  }
   0xe   :  { %687 = vmatmul.mubr.msk.bf16.gmra.mxu0 %vm79_vm0, %v736_v11 }
   0xf   :  { %11 = vsyncpa [#allocation3], 0  ;;  %697 = vmatmul.mubr.msk.bf16.gmra.mxu1 %vm79_vm0, %v737_v12  ;;  %702 = vmatprep.mubr.msk.bf16.mxu0 %vm79_vm0, %v728_v2  ;;  %v45_v17 = vld [vmem:[%s934_s2 + $0x20] sm:$0xff]  ;;  %v46_v18 = vld [vmem:[%s934_s2 + $0x28] sm:$0xff]  ;;  %vm355_vm1 = vcmask 519168  }
  0x10   :  { %712 = vmatprep.mubr.msk.bf16.mxu1 %vm79_vm0, %v729_v4  ;;  %267 = vperm.xlu0 %724, %v42_v15   ;;  %v47_v19 = vld [vmem:[%s934_s2 + $0x30] sm:$0xff]  ;;  %v48_v20 = vld [vmem:[%s934_s2 + $0x38] sm:$0xff]  ;;  %v611_v29 = vld [vmem:[%s937_s5] ss:$0 sm:$0xff] }
  0x11   :  { %277 = vperm.xlu1 %725, %v44_v16   ;;  %v635_v15 = vld [vmem:[%s937_s5 + $0x1] ss:$0 sm:$0xff]  ;;  %s761_s5 = smov [#allocation2]  }
  0x12   :  { %s582_s12 = sshll.u32 %s761_s5, 4  ;;  %s583_s12 = int_to_ptr.vmem [resolvable:$true] %s582_s12 }
  0x13   :  { %s738_s13 = scalar_lea.vmem %s583_s12, 1024  ;;  %p743_p1 = scmp.lt.s32.totalorder %s583_s12, %s583_s12 }
  0x14   :  { %282 = vperm.xlu0 %724, %v45_v17   ;;  %p739_p0 = scmp.ne.s32.totalorder %s583_s12, %s738_s13  ;;  %p744_p2 = scmp.lt.s32.totalorder %s738_s13, %s738_s13 }
  0x15   :  { %287 = vperm.xlu1 %725, %v46_v18  }
  0x16   :  { %703 = vmatmul.mubr.msk.bf16.vlgmr.msra.gmra.mxu0 %vm79_vm0, %v730_v5  ;;  %p745_p3 = por %p744_p2, %p743_p1 }
  0x17   :  { %713 = vmatmul.mubr.msk.bf16.vlgmr.msra.gmra.mxu1 %vm79_vm0, %v731_v6  ;;  %706 = vmatprep.mubr.msk.bf16.mxu0 %vm79_vm0, %v734_v9 }
  0x18   :  { %716 = vmatprep.mubr.msk.bf16.mxu1 %vm79_vm0, %v735_v10  ;;  %292 = vperm.xlu0 %724, %v47_v19   ;;  %p746_p4 = pnand %p745_p3, %p739_p0 }
  0x19   :  { %297 = vperm.xlu1 %725, %v48_v20  }
  0x1e   :  { %707 = vmatmul.mubr.msk.bf16.gmra.mxu0 %vm79_vm0, %v736_v11 }
  0x1f   :  { %717 = vmatmul.mubr.msk.bf16.gmra.mxu1 %vm79_vm0, %v737_v12 }
  0x84   :  { %v875_v21 = vpop.permute.xlu0 %262 }
  0x85   :  { %v877_v22 = vpop.permute.xlu1 %272 }
  0x8b   :  { %v879_v23 = vpop.permute.xlu0 %267 }
  0x8c   :  { %v881_v26 = vpop.permute.xlu1 %277 }
  0x8f   :  { %v886_v31 = vpop.permute.xlu0 %282 }
  0x90   :  { %v890_v41 = vpop.permute.xlu1 %287 }
  0x93   :  { %v893_v48 = vpop.permute.xlu0 %292 }
  0x94   :  { %v899_v61 = vpop.permute.xlu1 %297 }
  0xc6   :  { %v684_v24 = vpop.f32.mrf.mxu0 }
  0xc7   :  { %v694_v25 = vpop.f32.mrf.mxu1 }
  0xc8   :  { %v238_v27 = vadd.f32 %v694_v25, %v684_v24  ;;  %v126_v28 = vpop.f32.mrf.mxu0 }
  0xc9   :  { %v229_v30 = vpop.f32.mrf.mxu1 }
  0xca   :  { %v302_v32 = vmul.f32 %v877_v22, %v238_v27  ;;  %v230_v33 = vadd.f32 %v229_v30, %v126_v28  ;;  %v685_v34 = vpop.f32.mrf.mxu0 }
  0xcb   :  { %v695_v35 = vpop.f32.mrf.mxu1 }
  0xcc   :  { %v317_v36 = vadd.f32 %v611_v29, %v302_v32  ;;  %v300_v37 = vmul.f32 %v875_v21, %v230_v33  ;;  %v241_v38 = vadd.f32 %v695_v35, %v685_v34  ;;  %v129_v39 = vpop.f32.mrf.mxu0 }
  0xcd   :  { %v232_v40 = vpop.f32.mrf.mxu1 }
  0xce   :  { %v646_v42 = vpack.c.bf16 %v317_v36, %v317_v36  ;;  %v315_v43 = vadd.f32 %v611_v29, %v300_v37  ;;  %v303_v44 = vmul.f32 %v881_v26, %v241_v38  ;;  %v233_v45 = vadd.f32 %v232_v40, %v129_v39  ;;  %v688_v46 = vpop.f32.mrf.mxu0 }
  0xcf   :  { %v698_v47 = vpop.f32.mrf.mxu1 }
  0xd0   :  { %358 = vst.msk [vmem:[#allocation2 + $0x8] sm:$0xf] %vm355_vm1, %v646_v42  ;;  %v644_v49 = vpack.c.bf16 %v315_v43, %v315_v43  ;;  %v318_v50 = vadd.f32 %v611_v29, %v303_v44  ;;  %v301_v51 = vmul.f32 %v879_v23, %v233_v45  ;;  %v254_v52 = vadd.f32 %v698_v47, %v688_v46  ;;  %v142_v53 = vpop.f32.mrf.mxu0 }
  0xd1   :  { %v245_v54 = vpop.f32.mrf.mxu1 }
  0xd2   :  { %356 = vst.msk [vmem:[#allocation2] sm:$0xf] %vm355_vm1, %v644_v49  ;;  %v647_v55 = vpack.c.bf16 %v318_v50, %v318_v50  ;;  %v316_v56 = vadd.f32 %v611_v29, %v301_v51  ;;  %v246_v57 = vadd.f32 %v245_v54, %v142_v53  ;;  %v306_v58 = vmul.f32 %v893_v48, %v254_v52  ;;  %v689_v59 = vpop.f32.mrf.mxu0 }
  0xd3   :  { %v699_v60 = vpop.f32.mrf.mxu1 }
  0xd4   :  { %359 = vst.msk [vmem:[#allocation2 + $0xc] sm:$0xf] %vm355_vm1, %v647_v55  ;;  %v645_v62 = vpack.c.bf16 %v316_v56, %v316_v56  ;;  %v304_v63 = vmul.f32 %v886_v31, %v246_v57  ;;  %v321_v0 = vadd.f32 %v611_v29, %v306_v58  ;;  %v257_v1 = vadd.f32 %v699_v60, %v689_v59  ;;  %v145_v2 = vpop.f32.mrf.mxu0 }
  0xd5   :  { %v248_v3 = vpop.f32.mrf.mxu1 }
  0xd6   :  { %357 = vst.msk [vmem:[#allocation2 + $0x4] sm:$0xf] %vm355_vm1, %v645_v62  ;;  %v319_v4 = vadd.f32 %v611_v29, %v304_v63  ;;  %v650_v5 = vpack.c.bf16 %v321_v0, %v321_v0  ;;  %v307_v6 = vmul.f32 %v899_v61, %v257_v1  ;;  %v249_v7 = vadd.f32 %v248_v3, %v145_v2  ;;  %v704_v8 = vpop.f32.mrf.mxu0 }
  0xd7   :  { %v714_v9 = vpop.f32.mrf.mxu1 }
  0xd8   :  { %v648_v10 = vpack.c.bf16 %v319_v4, %v319_v4  ;;  %362 = vst.msk [vmem:[#allocation2 + $0x18] sm:$0xf] %vm355_vm1, %v650_v5  ;;  %v322_v11 = vadd.f32 %v611_v29, %v307_v6  ;;  %v305_v12 = vmul.f32 %v890_v41, %v249_v7  ;;  %v490_v13 = vadd.f32 %v714_v9, %v704_v8  ;;  %v410_v14 = vpop.f32.mrf.mxu0 }
  0xd9   :  { %v481_v16 = vpop.f32.mrf.mxu1 }
  0xda   :  { %360 = vst.msk [vmem:[#allocation2 + $0x10] sm:$0xf] %vm355_vm1, %v648_v10  ;;  %v651_v17 = vpack.c.bf16 %v322_v11, %v322_v11  ;;  %v320_v18 = vadd.f32 %v611_v29, %v305_v12  ;;  %v514_v19 = vmul.f32 %v490_v13, %v877_v22  ;;  %v482_v20 = vadd.f32 %v481_v16, %v410_v14  ;;  %v705_v24 = vpop.f32.mrf.mxu0 }
  0xdb   :  { %v715_v25 = vpop.f32.mrf.mxu1 }
  0xdc   :  { %363 = vst.msk [vmem:[#allocation2 + $0x1c] sm:$0xf] %vm355_vm1, %v651_v17  ;;  %v649_v27 = vpack.c.bf16 %v320_v18, %v320_v18  ;;  %v530_v28 = vadd.f32 %v635_v15, %v514_v19  ;;  %v512_v30 = vmul.f32 %v482_v20, %v875_v21  ;;  %v493_v32 = vadd.f32 %v715_v25, %v705_v24  ;;  %v413_v33 = vpop.f32.mrf.mxu0 }
  0xdd   :  { %v484_v34 = vpop.f32.mrf.mxu1 }
  0xde   :  { %361 = vst.msk [vmem:[#allocation2 + $0x14] sm:$0xf] %vm355_vm1, %v649_v27  ;;  %v654_v35 = vpack.c.bf16 %v530_v28, %v530_v28  ;;  %v528_v36 = vadd.f32 %v635_v15, %v512_v30  ;;  %v515_v29 = vmul.f32 %v493_v32, %v881_v26  ;;  %v485_v37 = vadd.f32 %v484_v34, %v413_v33  ;;  %v708_v22 = vpop.f32.mrf.mxu0 }
  0xdf   :  { %v718_v38 = vpop.f32.mrf.mxu1 }
  0xe0   :  { %571 = vst.msk [vmem:[#allocation2 + $0x28] sm:$0xf] %vm355_vm1, %v654_v35  ;;  %v652_v39 = vpack.c.bf16 %v528_v36, %v528_v36  ;;  %v531_v40 = vadd.f32 %v635_v15, %v515_v29  ;;  %v513_v42 = vmul.f32 %v485_v37, %v879_v23  ;;  %v506_v43 = vadd.f32 %v718_v38, %v708_v22  ;;  %v426_v21 = vpop.f32.mrf.mxu0 }
  0xe1   :  { %v497_v44 = vpop.f32.mrf.mxu1 }
  0xe2   :  { %569 = vst.msk [vmem:[#allocation2 + $0x20] sm:$0xf] %vm355_vm1, %v652_v39  ;;  %v655_v45 = vpack.c.bf16 %v531_v40, %v531_v40  ;;  %v529_v46 = vadd.f32 %v635_v15, %v513_v42  ;;  %v518_v47 = vmul.f32 %v506_v43, %v893_v48  ;;  %v498_v49 = vadd.f32 %v497_v44, %v426_v21  ;;  %v709_v26 = vpop.f32.mrf.mxu0 }
  0xe3   :  { %v719_v50 = vpop.f32.mrf.mxu1 }
  0xe4   :  { %572 = vst.msk [vmem:[#allocation2 + $0x2c] sm:$0xf] %vm355_vm1, %v655_v45  ;;  %v653_v51 = vpack.c.bf16 %v529_v46, %v529_v46  ;;  %v534_v52 = vadd.f32 %v635_v15, %v518_v47  ;;  %v516_v53 = vmul.f32 %v498_v49, %v886_v31  ;;  %v509_v54 = vadd.f32 %v719_v50, %v709_v26  ;;  %v429_v23 = vpop.f32.mrf.mxu0 }
  0xe5   :  { %v500_v55 = vpop.f32.mrf.mxu1 }
  0xe6   :  { %570 = vst.msk [vmem:[#allocation2 + $0x24] sm:$0xf] %vm355_vm1, %v653_v51  ;;  %v658_v56 = vpack.c.bf16 %v534_v52, %v534_v52  ;;  %v532_v57 = vadd.f32 %v635_v15, %v516_v53  ;;  %v519_v58 = vmul.f32 %v509_v54, %v899_v61  ;;  %v501_v59 = vadd.f32 %v500_v55, %v429_v23 }
  0xe8   :  { %575 = vst.msk [vmem:[#allocation2 + $0x38] sm:$0xf] %vm355_vm1, %v658_v56  ;;  %v656_v48 = vpack.c.bf16 %v532_v57, %v532_v57  ;;  %v535_v60 = vadd.f32 %v635_v15, %v519_v58  ;;  %v517_v62 = vmul.f32 %v501_v59, %v890_v41 }
  0xea   :  { %573 = vst.msk [vmem:[#allocation2 + $0x30] sm:$0xf] %vm355_vm1, %v656_v48  ;;  %v659_v31 = vpack.c.bf16 %v535_v60, %v535_v60  ;;  %v533_v63 = vadd.f32 %v635_v15, %v517_v62 }
  0xec   :  { %576 = vst.msk [vmem:[#allocation2 + $0x3c] sm:$0xf] %vm355_vm1, %v659_v31  ;;  %v657_v0 = vpack.c.bf16 %v533_v63, %v533_v63 }
  0xee   :  { %574 = vst.msk [vmem:[#allocation2 + $0x34] sm:$0xf] %vm355_vm1, %v657_v0 }
  0xef   :  { %749 = shalt.err (!%p746_p4)
}
  0xf0   :  { %s762_s14 = smov 64   ;;  %s763_s15 = smov 4  }
  0xf1   :  { %588 = dma.vmem_to_hbm [thread:$0]  %s583_s12, 1024, %s938_s6, [#allocation3], %s762_s14, %s762_s14, %s763_s15  }
  0xf2   :  { %758 = dma.done.wait [#allocation3], 1024  }
  0xf3   :  { %759 = vsyncadd [#allocation3], 4294966272 }
  0xf4   :  { %592 = vsyncpa [#allocation3], 1 }

</bundles_post_ra>
